<compile_context>
chip_gen: v7x
topology: tpu7x:2x2x1
jax: 0.10.0
libtpu: 0.0.40
codegen_flags: <defaults>
</compile_context>

<pallas_src>
import jax
import jax.numpy as jnp
from jax.experimental import pallas as pl
from jax.experimental.pallas import tpu as pltpu


def _round_up(v, m):
    return pl.cdiv(v, m) * m


def ensemble_kernel(x_ref, w_ref, b_ref, o_ref):
    """One (B-tile, D-tile) grid step of the fused ensemble forward.

    x_ref : VMEM (TB, TD)    f32 or bf16 input tile (cast to bf16 for the MXU)
    w_ref : VMEM (TD, KPAD)  bf16 folded effective weight tile
    b_ref : VMEM (1, KPAD)   f32  folded effective bias
    o_ref : VMEM (TB, KPAD)  f32  output tile, resident across the D axis
    """
    k = pl.program_id(1)

    # Initialize the resident output block with the broadcast bias -> no
    # epilogue pass; every later step just accumulates the matmul partial.
    @pl.when(k == 0)
    def _():
        o_ref[...] = jnp.broadcast_to(b_ref[...], o_ref.shape)

    o_ref[...] += jnp.dot(x_ref[...].astype(jnp.bfloat16), w_ref[...],
                          preferred_element_type=jnp.float32)


def pack_frozen_params(params):
    """Stack + K-pad the three FROZEN sub-model params once (reusable across calls)."""
    K = params["b1"].shape[-1]
    KPAD = _round_up(K, 128)                                   # lane-dense output
    w_stack = jnp.stack([params["w1"], params["w2"], params["w3"]],
                        axis=0).astype(jnp.float32)            # (3, D, K)
    b_stack = jnp.stack([params["b1"], params["b2"], params["b3"]],
                        axis=0).astype(jnp.float32)            # (3, 1, K)
    w_stack = jnp.pad(w_stack, ((0, 0), (0, 0), (0, KPAD - K)))
    b_stack = jnp.pad(b_stack, ((0, 0), (0, 0), (0, KPAD - K)))
    return {"w_stack": w_stack, "b_stack": b_stack, "K": K}


# Live-buffer budget: conservative for v7x (64 MiB physical / 32 MiB scoped
# default) and well within v5e/v6e once vmem_limit_bytes is raised to 32 MiB.
_VMEM_BUDGET = 24 * 1024 * 1024


def _pick_tiles(B, D, KPAD):
    # B tile: multiple of 16 (bf16 sublane packing). For large B, keep >= 2
    # parallel B blocks so v7x's two TensorCores both get work.
    if B >= 512:
        tb = 256
    elif B >= 256:
        tb = 128
    else:
        tb = min(256, _round_up(B, 16))

    x_bytes = 4                                  # budget conservatively for f32 x
    out_b = 2 * tb * KPAD * 4                    # double-buffered f32 output

    def fits(td_):
        w_b = 2 * td_ * KPAD * 2                 # folded bf16 weight, double-buffered
        x_b = 2 * tb * td_ * x_bytes             # x tile, double-buffered
        return w_b + x_b + out_b <= _VMEM_BUDGET

    if fits(D):
        return tb, D, True                       # weight fully resident, single k step
    for cand in (8192, 4096, 2048, 1024, 512, 256, 128):
        if cand <= D and fits(cand):
            return tb, cand, False
    return tb, 128, False


def ensemble_forward(x_nchw, params, packed=None):
    if packed is None:
        packed = pack_frozen_params(params)
    B = x_nchw.shape[0]
    x = x_nchw.reshape(B, -1)                    # NCHW -> (B, D), D = C*H*W
    D = x.shape[1]
    K = packed["K"]
    KPAD = packed["w_stack"].shape[-1]

    # Softmax over the 3 learnable ensemble weights, then fold the three frozen
    # sub-models into ONE effective weight/bias (tiny per-call XLA fusion over
    # D*KPAD).  The kernel then streams 1x weight bytes and does one matmul.
    nw = jax.nn.softmax(params["weight"].astype(jnp.float32).reshape(3))
    w_eff = jnp.tensordot(nw, packed["w_stack"], axes=1).astype(jnp.bfloat16)  # (D, KPAD)
    b_eff = jnp.tensordot(nw, packed["b_stack"], axes=1)                       # (1, KPAD) f32

    tb, td, resident = _pick_tiles(B, D, KPAD)
    BP = _round_up(B, tb)
    DP = D if resident else _round_up(D, td)

    if BP != B or DP != D:
        # Padding forces a copy anyway — fuse the bf16 cast into it so the
        # kernel streams 2 B/elem of x instead of 4.
        x = jnp.pad(x, ((0, BP - B), (0, DP - D))).astype(jnp.bfloat16)
    # else: feed f32 x straight through (per-tile cast in the kernel) — avoids
    # a standalone wrapper cast pass over the largest streamed tensor.
    if DP != D:
        w_eff = jnp.pad(w_eff, ((0, DP - D), (0, 0)))

    grid = (BP // tb, DP // td)                  # (parallel B, arbitrary D-reduction)

    out = pl.pallas_call(
        ensemble_kernel,
        out_shape=jax.ShapeDtypeStruct((BP, KPAD), jnp.float32),
        grid_spec=pltpu.PrefetchScalarGridSpec(
            num_scalar_prefetch=0,
            grid=grid,
            in_specs=[
                pl.BlockSpec((tb, td), lambda i, k: (i, k)),      # x
                pl.BlockSpec((td, KPAD), lambda i, k: (k, 0)),    # folded weight
                pl.BlockSpec((1, KPAD), lambda i, k: (0, 0)),     # folded bias
            ],
            out_specs=pl.BlockSpec((tb, KPAD), lambda i, k: (i, 0)),
        ),
        compiler_params=pltpu.CompilerParams(
            dimension_semantics=("parallel", "arbitrary"),
            vmem_limit_bytes=32 * 1024 * 1024),
    )(x, w_eff, b_eff)

    return out[:B, :K]


def make_params(key, D, K):
    ks = jax.random.split(key, 6)
    scale = 0.02
    return {
        # nn.Parameter(torch.tensor([1.0, 1.0, 1.0]))
        "weight": jnp.array([1.0, 1.0, 1.0], dtype=jnp.float32),
        "w1": scale * jax.random.normal(ks[0], (D, K), jnp.float32),
        "b1": scale * jax.random.normal(ks[1], (1, K), jnp.float32),
        "w2": scale * jax.random.normal(ks[2], (D, K), jnp.float32),
        "b2": scale * jax.random.normal(ks[3], (1, K), jnp.float32),
        "w3": scale * jax.random.normal(ks[4], (D, K), jnp.float32),
        "b3": scale * jax.random.normal(ks[5], (1, K), jnp.float32),
    }


def reference_forward(x_nchw, params):
    B = x_nchw.shape[0]
    x = x_nchw.reshape(B, -1).astype(jnp.float32)
    o1 = x @ params["w1"] + params["b1"]
    o2 = x @ params["w2"] + params["b2"]
    o3 = x @ params["w3"] + params["b3"]
    nw = jax.nn.softmax(params["weight"])
    return nw[0] * o1 + nw[1] * o2 + nw[2] * o3


if __name__ == "__main__":
    B, C, H, W = 2, 4, 16, 16          # NCHW, matching the PyTorch convention
    K = 10                             # classifier outputs per sub-model
    D = C * H * W

    key = jax.random.PRNGKey(0)
    kx, kp = jax.random.split(key)
    x = jax.random.normal(kx, (B, C, H, W), jnp.float32)
    params = make_params(kp, D, K)

    # Frozen sub-model packing is done once and reused across forward calls.
    packed = pack_frozen_params(params)

    out = ensemble_forward(x, params, packed=packed)
    out = jax.block_until_ready(out)

    ref = reference_forward(x, params)
    assert out.shape == (B, K)
    # bf16 matmul operands -> loosened tolerance vs the pure-f32 reference.
    assert jnp.allclose(out, ref, atol=2e-2, rtol=2e-2), (
        f"max abs err = {jnp.max(jnp.abs(out - ref))}")
    print("KERNEL_OK")
</pallas_src>

<mosaic_0001>
module attributes {stable_mosaic.version = 11 : i64} {
  func.func @ensemble_kernel(%arg0: i32, %arg1: i32, %arg2: memref<16x1024xbf16, #tpu.memory_space<vmem>>, %arg3: memref<1024x128xbf16, #tpu.memory_space<vmem>>, %arg4: memref<1x128xf32, #tpu.memory_space<vmem>>, %arg5: memref<16x128xf32, #tpu.memory_space<vmem>>) attributes {dimension_semantics = [#tpu.dimension_semantics<parallel>, #tpu.dimension_semantics<arbitrary>], iteration_bounds = array<i64: 1, 1>, scalar_prefetch = 0 : i64, scratch_operands = 0 : i64, tpu.core_type = #tpu.core_type<tc>, window_params = [{transform_indices = @transform_0, window_bounds = array<i64: 16, 1024>}, {transform_indices = @transform_1, window_bounds = array<i64: 1024, 128>}, {pipeline_mode = #tpu.pipeline_mode<synchronous>, transform_indices = @transform_2, window_bounds = array<i64: 1, 128>}, {transform_indices = @transform_3, window_bounds = array<i64: 16, 128>}]} {
    %c0_i32 = arith.constant 0 : i32
    %0 = arith.cmpi eq, %arg1, %c0_i32 : i32
    %1 = arith.extui %0 : i1 to i32
    %c0_i32_0 = arith.constant 0 : i32
    %2 = arith.cmpi ne, %1, %c0_i32_0 : i32
    scf.if %2 {
      %c0_8 = arith.constant 0 : index
      %c0_9 = arith.constant 0 : index
      %9 = vector.load %arg4[%c0_8, %c0_9] : memref<1x128xf32, #tpu.memory_space<vmem>>, vector<1x128xf32>
      %10 = vector.shape_cast %9 : vector<1x128xf32> to vector<1x128xf32>
      %11 = vector.broadcast %10 : vector<1x128xf32> to vector<16x128xf32>
      %c0_10 = arith.constant 0 : index
      %c0_11 = arith.constant 0 : index
      %12 = vector.load %arg5[%c0_10, %c0_11] : memref<16x128xf32, #tpu.memory_space<vmem>>, vector<16x128xf32>
      tpu.vector_store %arg5[%c0_10, %c0_11], %11 {strides = array<i32>} : memref<16x128xf32, #tpu.memory_space<vmem>>, vector<16x128xf32>,
    } else {
    }
    %c0 = arith.constant 0 : index
    %c0_1 = arith.constant 0 : index
    %3 = vector.load %arg5[%c0, %c0_1] : memref<16x128xf32, #tpu.memory_space<vmem>>, vector<16x128xf32>
    %c0_2 = arith.constant 0 : index
    %c0_3 = arith.constant 0 : index
    %4 = vector.load %arg2[%c0_2, %c0_3] : memref<16x1024xbf16, #tpu.memory_space<vmem>>, vector<16x1024xbf16>
    %c0_4 = arith.constant 0 : index
    %c0_5 = arith.constant 0 : index
    %5 = vector.load %arg3[%c0_4, %c0_5] : memref<1024x128xbf16, #tpu.memory_space<vmem>>, vector<1024x128xbf16>
    %cst = arith.constant dense<0.000000e+00> : vector<16x128xf32>
    %6 = tpu.matmul %4, %5, %cst {dimension_numbers = #tpu.dot_dimension_numbers<[1], [0], [0], [1], [0, 0, 1, 1], [], []>} : vector<16x1024xbf16>, vector<1024x128xbf16>, vector<16x128xf32> -> vector<16x128xf32>
    %7 = arith.addf %3, %6 : vector<16x128xf32>
    %c0_6 = arith.constant 0 : index
    %c0_7 = arith.constant 0 : index
    %8 = vector.load %arg5[%c0_6, %c0_7] : memref<16x128xf32, #tpu.memory_space<vmem>>, vector<16x128xf32>
    tpu.vector_store %arg5[%c0_6, %c0_7], %7 {strides = array<i32>} : memref<16x128xf32, #tpu.memory_space<vmem>>, vector<16x128xf32>,
    return
  }
  func.func @transform_0(%arg0: i32, %arg1: i32) -> (i32, i32) {
    %c0_i32 = arith.constant 0 : i32
    return %arg0, %arg1 : i32, i32
  }
  func.func @transform_1(%arg0: i32, %arg1: i32) -> (i32, i32) {
    %c0_i32 = arith.constant 0 : i32
    %c0_i32_0 = arith.constant 0 : i32
    return %arg1, %c0_i32 : i32, i32
  }
  func.func @transform_2(%arg0: i32, %arg1: i32) -> (i32, i32) {
    %c0_i32 = arith.constant 0 : i32
    %c0_i32_0 = arith.constant 0 : i32
    %c0_i32_1 = arith.constant 0 : i32
    return %c0_i32, %c0_i32_0 : i32, i32
  }
  func.func @transform_3(%arg0: i32, %arg1: i32) -> (i32, i32) {
    %c0_i32 = arith.constant 0 : i32
    %c0_i32_0 = arith.constant 0 : i32
    return %arg0, %c0_i32 : i32, i32
  }
}

</mosaic_0001>

<bundles_post_ra>
// kernel: tpu_custom_call.1
= control target key start
LH: loop header
LB: loop body
LE: loop exit
PB: predicated region body
PF: predicated region fallthrough
CT: control target
= control target key end

     0   :  { %8 = vsyncpa [#allocation3], 0  ;;  %s1179_s0 = inlined_call_operand.hbm [shape: bf16[16,1024], index: 0, kind: input, shape index: {}]   ;;  %s1180_s1 = inlined_call_operand.hbm [shape: bf16[1024,128], index: 1, kind: input, shape index: {}]   ;;  %s1181_s2 = inlined_call_operand.vmem [shape: f32[1,128], index: 2, kind: input, shape index: {}]   ;;  %s1182_s3 = inlined_call_operand.hbm [shape: f32[16,128], index: 3, kind: output, shape index: {}]  }
   0x1   :  { %9 = vsyncpa [#allocation6], 0 }
   0x2   :  { %10 = vsyncpa [#allocation4], 0  ;;  %s1111_s12 = smov [#allocation2]   ;;  %s1039_s16 = scalar_lea.hbm %s1179_s0, 1024 }
   0x3   :  { %s16_s13 = sshll.u32 %s1111_s12, 4  ;;  %p1040_p0 = scmp.ne.s32.totalorder %s1179_s0, %s1039_s16  ;;  %s17_s13 = int_to_ptr.vmem [resolvable:$true] %s16_s13 }
   0x4   :  { %p1043_p1 = scmp.lt.u32.totalorder %s1039_s16, %s1179_s0 }
   0x6   :  { %p1045_p2 = pnand %p1043_p1, %p1040_p0 }
   0x8   :  { %1048 = shalt.err (!%p1045_p2)
}
   0x9   :  { %s1049_s21 = scalar_lea.vmem %s17_s13, 1024  ;;  %p1054_p4 = scmp.lt.s32.totalorder %s17_s13, %s17_s13 }
   0xa   :  { %p1050_p3 = scmp.ne.s32.totalorder %s17_s13, %s1049_s21  ;;  %p1055_p5 = scmp.lt.s32.totalorder %s1049_s21, %s1049_s21 }
   0xc   :  { %p1056_p6 = por %p1055_p5, %p1054_p4 }
   0xe   :  { %p1057_p7 = pnand %p1056_p6, %p1050_p3 }
  0x10   :  { %1060 = shalt.err (!%p1057_p7)
}
  0x11   :  { %s1112_s22 = smov 512   ;;  %s1113_s23 = smov 32  }
  0x12   :  { %22 = dma.hbm_to_vmem [thread:$0]  %s1179_s0, 1024, %s17_s13, [#allocation3], %s1112_s22, %s1112_s22, %s1113_s23  }
  0x13   :  { %s1114_s26 = smov [#allocation5]   ;;  %s1061_s30 = scalar_lea.hbm %s1180_s1, 8192 }
  0x14   :  { %s28_s27 = sshll.u32 %s1114_s26, 4  ;;  %p1062_p8 = scmp.ne.s32.totalorder %s1180_s1, %s1061_s30  ;;  %s29_s27 = int_to_ptr.vmem [resolvable:$true] %s28_s27 }
  0x15   :  { %p1065_p9 = scmp.lt.u32.totalorder %s1061_s30, %s1180_s1 }
  0x17   :  { %p1067_p10 = pnand %p1065_p9, %p1062_p8 }
  0x19   :  { %1070 = shalt.err (!%p1067_p10)
}
  0x1a   :  { %s1071_s8 = scalar_lea.vmem %s29_s27, 8192  ;;  %p1076_p12 = scmp.lt.s32.totalorder %s29_s27, %s29_s27 }
  0x1b   :  { %p1072_p11 = scmp.ne.s32.totalorder %s29_s27, %s1071_s8  ;;  %p1077_p13 = scmp.lt.s32.totalorder %s1071_s8, %s1071_s8 }
  0x1d   :  { %p1078_p0 = por %p1077_p13, %p1076_p12 }
  0x1f   :  { %p1079_p1 = pnand %p1078_p0, %p1072_p11 }
  0x21   :  { %1082 = shalt.err (!%p1079_p1)
}
  0x22   :  { %s1115_s0 = smov 64   ;;  %s1116_s9 = smov 4  }
  0x23   :  { %34 = dma.hbm_to_vmem [thread:$0]  %s1180_s1, 8192, %s29_s27, [#allocation6], %s1115_s0, %s1115_s0, %s1116_s9  }
  0x24   :  { %1105 = dma.done.wait [#allocation3], 1024  }
  0x25   :  { %1106 = vsyncadd [#allocation3], 4294966272 }
  0x26   :  { %1107 = dma.done.wait [#allocation6], 8192  }
  0x27   :  { %1108 = vsyncadd [#allocation6], 4294959104  ;;  %v975_v0 = vld [vmem:[#allocation5 + $0x40] sm:$0xff]   ;;  %v979_v4 = vld [vmem:[#allocation5 + $0x48] sm:$0xff]   ;;  %s1117_s13 = smov [#allocation7]  }
  0x28   :  { %v976_v1 = vld [vmem:[#allocation5 + $0xc0] sm:$0xff]   ;;  %878 = vmatprep.subr.bf16.mxu0 %v975_v0  ;;  %v980_v5 = vld [vmem:[#allocation5 + $0xc8] sm:$0xff]   ;;  %v983_v8 = vld [vmem:[#allocation5 + $0x50] sm:$0xff]   ;;  %s792_s14 = sshll.u32 %s1117_s13, 4  ;;  %s793_s14 = int_to_ptr.vmem [resolvable:$true] %s792_s14 }
  0x29   :  { %v977_v2 = vld [vmem:[#allocation5] sm:$0xff]   ;;  %900 = vmatprep.subr.bf16.mxu1 %v976_v1  ;;  %v981_v6 = vld [vmem:[#allocation5 + $0x8] sm:$0xff]   ;;  %v984_v9 = vld [vmem:[#allocation5 + $0xd0] sm:$0xff]   ;;  %s1083_s15 = scalar_lea.vmem %s793_s14, 256  ;;  %p1088_p3 = scmp.lt.s32.totalorder %s793_s14, %s793_s14 }
  0x2a   :  { %v978_v3 = vld [vmem:[#allocation5 + $0x80] sm:$0xff]   ;;  %879 = vmatpush3.bf16.msra.mxu0 %v977_v2  ;;  %v982_v7 = vld [vmem:[#allocation5 + $0x88] sm:$0xff]   ;;  %v985_v10 = vld [vmem:[#allocation5 + $0x10] sm:$0xff]   ;;  %p1084_p2 = scmp.ne.s32.totalorder %s793_s14, %s1083_s15  ;;  %p1089_p4 = scmp.lt.s32.totalorder %s1083_s15, %s1083_s15 }
  0x2b   :  { %901 = vmatpush3.bf16.msra.mxu1 %v978_v3  ;;  %880 = vmatprep.subr.bf16.mxu0 %v979_v4  ;;  %v986_v11 = vld [vmem:[#allocation5 + $0x90] sm:$0xff]   ;;  %v987_v12 = vld [vmem:[#allocation5 + $0x58] sm:$0xff]   ;;  %v991_v16 = vld [vmem:[#allocation5 + $0x60] sm:$0xff]  }
  0x2c   :  { %902 = vmatprep.subr.bf16.mxu1 %v980_v5  ;;  %v988_v13 = vld [vmem:[#allocation5 + $0xd8] sm:$0xff]   ;;  %v992_v17 = vld [vmem:[#allocation5 + $0xe0] sm:$0xff]   ;;  %v995_v20 = vld [vmem:[#allocation5 + $0x68] sm:$0xff]   ;;  %p1090_p5 = por %p1089_p4, %p1088_p3 }
  0x2d   :  { %v989_v14 = vld [vmem:[#allocation5 + $0x18] sm:$0xff]   ;;  %v993_v18 = vld [vmem:[#allocation5 + $0x20] sm:$0xff]   ;;  %v996_v21 = vld [vmem:[#allocation5 + $0xe8] sm:$0xff]  }
  0x2e   :  { %881 = vmatpush3.bf16.msra.mxu0 %v981_v6  ;;  %v990_v15 = vld [vmem:[#allocation5 + $0x98] sm:$0xff]   ;;  %v994_v19 = vld [vmem:[#allocation5 + $0xa0] sm:$0xff]   ;;  %v997_v22 = vld [vmem:[#allocation5 + $0x28] sm:$0xff]   ;;  %p1091_p6 = pnand %p1090_p5, %p1084_p2 }
  0x2f   :  { %903 = vmatpush3.bf16.msra.mxu1 %v982_v7  ;;  %882 = vmatprep.subr.bf16.mxu0 %v983_v8  ;;  %v998_v23 = vld [vmem:[#allocation5 + $0xa8] sm:$0xff]   ;;  %v999_v24 = vld [vmem:[#allocation5 + $0x70] sm:$0xff]   ;;  %v1003_v28 = vld [vmem:[#allocation5 + $0x78] sm:$0xff]  }
  0x30   :  { %904 = vmatprep.subr.bf16.mxu1 %v984_v9  ;;  %v1000_v25 = vld [vmem:[#allocation5 + $0xf0] sm:$0xff]   ;;  %v1004_v29 = vld [vmem:[#allocation5 + $0xf8] sm:$0xff]   ;;  %v59_v32 = vld [vmem:[#allocation2] sm:$0xff] }
  0x31   :  { %v1001_v26 = vld [vmem:[#allocation5 + $0x30] sm:$0xff]   ;;  %v1005_v30 = vld [vmem:[#allocation5 + $0x38] sm:$0xff]   ;;  %v63_v33 = vld [vmem:[#allocation2 + $0x20] sm:$0xff] }
  0x32   :  { %883 = vmatpush3.bf16.msra.mxu0 %v985_v10  ;;  %v1002_v27 = vld [vmem:[#allocation5 + $0xb0] sm:$0xff]   ;;  %v1006_v31 = vld [vmem:[#allocation5 + $0xb8] sm:$0xff]   ;;  %v60_v34 = vld [vmem:[#allocation2 + $0x8] sm:$0xff]  ;;  %v806_v35 = vcombine.low %v59_v32, %v63_v33  ;;  %v807_v36 = vcombine.high %v59_v32, %v63_v33 }
  0x33   :  { %905 = vmatpush3.bf16.msra.mxu1 %v986_v11  ;;  %884 = vmatprep.subr.bf16.mxu0 %v987_v12  ;;  %v64_v37 = vld [vmem:[#allocation2 + $0x28] sm:$0xff]  ;;  %v1007_v40 = vld [vmem:[#allocation5 + $0x140] sm:$0xff]   ;;  %v1015_v48 = vld [vmem:[#allocation5 + $0x150] sm:$0xff]  }
  0x34   :  { %906 = vmatprep.subr.bf16.mxu1 %v988_v13  ;;  %v808_v38 = vcombine.low %v60_v34, %v64_v37  ;;  %v809_v39 = vcombine.high %v60_v34, %v64_v37  ;;  %651 = vmatprep.mubr.bf16.mxu0 %v807_v36  ;;  %v1008_v41 = vld [vmem:[#allocation5 + $0x1c0] sm:$0xff]   ;;  %v1011_v44 = vld [vmem:[#allocation5 + $0x148] sm:$0xff]   ;;  %v1016_v49 = vld [vmem:[#allocation5 + $0x1d0] sm:$0xff]  }
  0x35   :  { %v1009_v42 = vld [vmem:[#allocation5 + $0x100] sm:$0xff]   ;;  %v1012_v45 = vld [vmem:[#allocation5 + $0x1c8] sm:$0xff]   ;;  %v1017_v50 = vld [vmem:[#allocation5 + $0x110] sm:$0xff]  }
  0x36   :  { %885 = vmatpush3.bf16.msra.mxu0 %v989_v14  ;;  %692 = vmatprep.mubr.bf16.mxu1 %v809_v39  ;;  %v1010_v43 = vld [vmem:[#allocation5 + $0x180] sm:$0xff]   ;;  %v1013_v46 = vld [vmem:[#allocation5 + $0x108] sm:$0xff]   ;;  %v1018_v51 = vld [vmem:[#allocation5 + $0x190] sm:$0xff]  }
  0x37   :  { %907 = vmatpush3.bf16.msra.mxu1 %v990_v15  ;;  %886 = vmatprep.subr.bf16.mxu0 %v991_v16  ;;  %v1014_v47 = vld [vmem:[#allocation5 + $0x188] sm:$0xff]   ;;  %v1019_v52 = vld [vmem:[#allocation5 + $0x158] sm:$0xff]   ;;  %v1023_v56 = vld [vmem:[#allocation5 + $0x160] sm:$0xff]  }
  0x38   :  { %908 = vmatprep.subr.bf16.mxu1 %v992_v17  ;;  %v1020_v53 = vld [vmem:[#allocation5 + $0x1d8] sm:$0xff]   ;;  %v1024_v57 = vld [vmem:[#allocation5 + $0x1e0] sm:$0xff]   ;;  %v1027_v60 = vld [vmem:[#allocation5 + $0x168] sm:$0xff]  }
  0x39   :  { %v1021_v54 = vld [vmem:[#allocation5 + $0x118] sm:$0xff]   ;;  %v1025_v58 = vld [vmem:[#allocation5 + $0x120] sm:$0xff]   ;;  %v1028_v61 = vld [vmem:[#allocation5 + $0x1e8] sm:$0xff]  }
  0x3a   :  { %887 = vmatpush3.bf16.msra.mxu0 %v993_v18  ;;  %v1022_v55 = vld [vmem:[#allocation5 + $0x198] sm:$0xff]   ;;  %v1026_v59 = vld [vmem:[#allocation5 + $0x1a0] sm:$0xff]   ;;  %v1029_v62 = vld [vmem:[#allocation5 + $0x128] sm:$0xff]  }
  0x3b   :  { %909 = vmatpush3.bf16.msra.mxu1 %v994_v19  ;;  %888 = vmatprep.subr.bf16.mxu0 %v995_v20  ;;  %v1030_v63 = vld [vmem:[#allocation5 + $0x1a8] sm:$0xff]   ;;  %v1031_v0 = vld [vmem:[#allocation5 + $0x170] sm:$0xff]   ;;  %v1035_v4 = vld [vmem:[#allocation5 + $0x178] sm:$0xff]  }
  0x3c   :  { %910 = vmatprep.subr.bf16.mxu1 %v996_v21  ;;  %v1032_v1 = vld [vmem:[#allocation5 + $0x1f0] sm:$0xff]   ;;  %v1036_v5 = vld [vmem:[#allocation5 + $0x1f8] sm:$0xff]  }
  0x3d   :  { %v1033_v2 = vld [vmem:[#allocation5 + $0x130] sm:$0xff]   ;;  %v1037_v6 = vld [vmem:[#allocation5 + $0x138] sm:$0xff]  }
  0x3e   :  { %889 = vmatpush3.bf16.msra.mxu0 %v997_v22  ;;  %v1034_v3 = vld [vmem:[#allocation5 + $0x1b0] sm:$0xff]   ;;  %v1038_v7 = vld [vmem:[#allocation5 + $0x1b8] sm:$0xff]  }
  0x3f   :  { %911 = vmatpush3.bf16.msra.mxu1 %v998_v23  ;;  %890 = vmatprep.subr.bf16.mxu0 %v999_v24  ;;  %v61_v8 = vld [vmem:[#allocation2 + $0x10] sm:$0xff]  ;;  %v62_v12 = vld [vmem:[#allocation2 + $0x18] sm:$0xff] }
  0x40   :  { %912 = vmatprep.subr.bf16.mxu1 %v1000_v25  ;;  %v65_v9 = vld [vmem:[#allocation2 + $0x30] sm:$0xff]  ;;  %v66_v13 = vld [vmem:[#allocation2 + $0x38] sm:$0xff] }
  0x41   :  { %v810_v10 = vcombine.low %v61_v8, %v65_v9  ;;  %v811_v11 = vcombine.high %v61_v8, %v65_v9  ;;  %v812_v14 = vcombine.low %v62_v12, %v66_v13  ;;  %v813_v15 = vcombine.high %v62_v12, %v66_v13 }
  0x42   :  { %891 = vmatpush3.bf16.msra.mxu0 %v1001_v26 }
  0x43   :  { %913 = vmatpush3.bf16.msra.mxu1 %v1002_v27  ;;  %892 = vmatprep.subr.bf16.mxu0 %v1003_v28 }
  0x44   :  { %914 = vmatprep.subr.bf16.mxu1 %v1004_v29 }
  0x46   :  { %893 = vmatpush3.bf16.msra.mxu0 %v1005_v30 }
  0x47   :  { %915 = vmatpush3.bf16.msra.mxu1 %v1006_v31  ;;  %922 = vmatprep.subr.bf16.mxu0 %v1007_v40 }
  0x48   :  { %944 = vmatprep.subr.bf16.mxu1 %v1008_v41 }
  0x49   :  { %652 = vmatmul.mubr.bf16.vlgmr.msra.gmra.mrb[0].mxu0 %v806_v35 }
  0x4a   :  { %693 = vmatmul.mubr.bf16.vlgmr.msra.gmra.mrb[0].mxu1 %v808_v38  ;;  %923 = vmatpush3.bf16.msra.mxu0 %v1009_v42  ;;  %v805_v42 = vld [vmem:[%s1181_s2] ss:$0 sm:$0xff] }
  0x4b   :  { %945 = vmatpush3.bf16.msra.mxu1 %v1010_v43  ;;  %924 = vmatprep.subr.bf16.mxu0 %v1011_v44 }
  0x4c   :  { %946 = vmatprep.subr.bf16.mxu1 %v1012_v45  ;;  %733 = vmatprep.mubr.bf16.mxu0 %v811_v11 }
  0x4d   :  { %774 = vmatprep.mubr.bf16.mxu1 %v813_v15 }
  0x4e   :  { %925 = vmatpush3.bf16.msra.mxu0 %v1013_v46 }
  0x4f   :  { %947 = vmatpush3.bf16.msra.mxu1 %v1014_v47  ;;  %926 = vmatprep.subr.bf16.mxu0 %v1015_v48 }
  0x50   :  { %948 = vmatprep.subr.bf16.mxu1 %v1016_v49 }
  0x52   :  { %927 = vmatpush3.bf16.msra.mxu0 %v1017_v50 }
  0x53   :  { %949 = vmatpush3.bf16.msra.mxu1 %v1018_v51  ;;  %928 = vmatprep.subr.bf16.mxu0 %v1019_v52 }
  0x54   :  { %950 = vmatprep.subr.bf16.mxu1 %v1020_v53 }
  0x56   :  { %929 = vmatpush3.bf16.msra.mxu0 %v1021_v54 }
  0x57   :  { %951 = vmatpush3.bf16.msra.mxu1 %v1022_v55  ;;  %930 = vmatprep.subr.bf16.mxu0 %v1023_v56 }
  0x58   :  { %952 = vmatprep.subr.bf16.mxu1 %v1024_v57 }
  0x5a   :  { %931 = vmatpush3.bf16.msra.mxu0 %v1025_v58 }
  0x5b   :  { %953 = vmatpush3.bf16.msra.mxu1 %v1026_v59  ;;  %932 = vmatprep.subr.bf16.mxu0 %v1027_v60 }
  0x5c   :  { %954 = vmatprep.subr.bf16.mxu1 %v1028_v61 }
  0x5e   :  { %933 = vmatpush3.bf16.msra.mxu0 %v1029_v62 }
  0x5f   :  { %955 = vmatpush3.bf16.msra.mxu1 %v1030_v63  ;;  %934 = vmatprep.subr.bf16.mxu0 %v1031_v0 }
  0x60   :  { %956 = vmatprep.subr.bf16.mxu1 %v1032_v1 }
  0x62   :  { %935 = vmatpush3.bf16.msra.mxu0 %v1033_v2 }
  0x63   :  { %957 = vmatpush3.bf16.msra.mxu1 %v1034_v3  ;;  %936 = vmatprep.subr.bf16.mxu0 %v1035_v4 }
  0x64   :  { %958 = vmatprep.subr.bf16.mxu1 %v1036_v5 }
  0x66   :  { %937 = vmatpush3.bf16.msra.mxu0 %v1037_v6 }
  0x67   :  { %959 = vmatpush3.bf16.msra.mxu1 %v1038_v7 }
  0x69   :  { %734 = vmatmul.mubr.bf16.vlgmr.msra.gmra.mrb[4].mxu0 %v810_v10 }
  0x6a   :  { %775 = vmatmul.mubr.bf16.vlgmr.msra.gmra.mrb[4].mxu1 %v812_v14 }
 0x11c   :  { %v894_v16 = vpop.f32.mrb[0].mxu0 }
 0x11d   :  { %v916_v17 = vpop.f32.mrb[0].mxu1  ;;  %v895_v18 = vpop.f32.mrb[1].mxu0 }
 0x11e   :  { %v896_v19 = vadd.f32 %v895_v18, %v894_v16  ;;  %v917_v20 = vpop.f32.mrb[1].mxu1  ;;  %v897_v21 = vpop.f32.mrb[2].mxu0 }
 0x11f   :  { %v918_v22 = vadd.f32 %v917_v20, %v916_v17  ;;  %v919_v23 = vpop.f32.mrb[2].mxu1  ;;  %v898_v24 = vpop.f32.mrb[3].mxu0 }
 0x120   :  { %v899_v25 = vadd.f32 %v898_v24, %v897_v21  ;;  %v920_v26 = vpop.f32.mrb[3].mxu1 }
 0x121   :  { %v695_v27 = vadd.f32 %v918_v22, %v896_v19  ;;  %v921_v28 = vadd.f32 %v920_v26, %v919_v23 }
 0x123   :  { %v698_v29 = vadd.f32 %v921_v28, %v899_v25 }
 0x13c   :  { %v938_v30 = vpop.f32.mrb[4].mxu0 }
 0x13d   :  { %v960_v31 = vpop.f32.mrb[4].mxu1  ;;  %v939_v32 = vpop.f32.mrb[5].mxu0 }
 0x13e   :  { %v940_v33 = vadd.f32 %v939_v32, %v938_v30  ;;  %v961_v34 = vpop.f32.mrb[5].mxu1  ;;  %v941_v35 = vpop.f32.mrb[6].mxu0 }
 0x13f   :  { %v962_v36 = vadd.f32 %v961_v34, %v960_v31  ;;  %v963_v37 = vpop.f32.mrb[6].mxu1  ;;  %v942_v38 = vpop.f32.mrb[7].mxu0 }
 0x140   :  { %v736_v39 = vadd.f32 %v940_v33, %v695_v27  ;;  %v943_v40 = vadd.f32 %v942_v38, %v941_v35  ;;  %v964_v41 = vpop.f32.mrb[7].mxu1 }
 0x141   :  { %v965_v43 = vadd.f32 %v964_v41, %v963_v37 }
 0x142   :  { %v777_v44 = vadd.f32 %v962_v36, %v736_v39  ;;  %v739_v45 = vadd.f32 %v943_v40, %v698_v29 }
 0x144   :  { %v783_v46 = vadd.f32 %v805_v42, %v777_v44  ;;  %v780_v47 = vadd.f32 %v965_v43, %v739_v45 }
 0x146   :  { %785 = vst [vmem:[#allocation7] sm:$0xff] %v783_v46  ;;  %v784_v48 = vadd.f32 %v805_v42, %v780_v47 }
 0x148   :  { %786 = vst [vmem:[#allocation7 + $0x8] sm:$0xff] %v784_v48 }
 0x149   :  { %1094 = shalt.err (!%p1091_p6)
}
 0x14a   :  { %s1095_s17 = scalar_lea.hbm %s1182_s3, 256 }
 0x14b   :  { %p1096_p7 = scmp.ne.s32.totalorder %s1182_s3, %s1095_s17  ;;  %p1099_p8 = scmp.lt.u32.totalorder %s1095_s17, %s1182_s3 }
 0x14d   :  { %p1101_p9 = pnand %p1099_p8, %p1096_p7 }
 0x14f   :  { %1104 = shalt.err (!%p1101_p9)
}
 0x150   :  { %s1118_s22 = smov 128   ;;  %s1119_s23 = smov 8  }
 0x151   :  { %798 = dma.vmem_to_hbm [thread:$0]  %s793_s14, 256, %s1182_s3, [#allocation4], %s1118_s22, %s1118_s22, %s1119_s23  }
 0x152   :  { %1109 = dma.done.wait [#allocation4], 256  }
 0x153   :  { %1110 = vsyncadd [#allocation4], 4294967040 }
 0x154   :  { %802 = vsyncpa [#allocation3], 1 }
 0x155   :  { %803 = vsyncpa [#allocation6], 1 }
 0x156   :  { %804 = vsyncpa [#allocation4], 1 }

</bundles_post_ra>
